<compile_context>
chip_gen: v7x
topology: tpu7x:2x2x1
jax: 0.10.0
libtpu: 0.0.40
codegen_flags: <defaults>
</compile_context>

<pallas_src>
import math

import jax
import jax.numpy as jnp
from jax.experimental import pallas as pl
from jax.experimental.pallas import tpu as pltpu

IN_FEATURES = 16
HIDDEN = 8
LANES = 128
PACK = LANES // IN_FEATURES  # 8 feature-vectors per 128-lane row


def _fused_affine_kernel(x_ref, w_ref, b_ref, o_ref):
    # x_ref: (tm, 128)  w_ref: (128, 128)  b_ref: (1, 128)  o_ref: (tm, 128)
    o_ref[...] = (
        jnp.dot(x_ref[...], w_ref[...], preferred_element_type=jnp.float32)
        + b_ref[...]
    ).astype(o_ref.dtype)


def simple_module2_forward(x, w1, b1, w2, b2, *, tile_rows=1024):
    """Pallas implementation of SimpleModule2.forward.

    x  : (batch, ..., 16)
    w1 : (8, 16),  b1 : (8,)  or None   -- linear1 (torch layout [out, in])
    w2 : (16, 8),  b2 : (16,) or None   -- linear2
    Returns torch.flatten(x + linear2(linear1(x)), start_dim=1):
    shape (x.shape[0], prod(x.shape[1:])).
    """
    orig_shape = x.shape
    assert orig_shape[-1] == IN_FEATURES, orig_shape
    batch = orig_shape[0]
    m = math.prod(orig_shape[:-1])
    x2d = x.reshape(m, IN_FEATURES)

    f32 = jnp.float32
    w1f = jnp.asarray(w1, f32)
    w2f = jnp.asarray(w2, f32)
    b1f = jnp.zeros((HIDDEN,), f32) if b1 is None else jnp.asarray(b1, f32)
    b2f = jnp.zeros((IN_FEATURES,), f32) if b2 is None else jnp.asarray(b2, f32)

    # --- fold the two Linears + residual into one 16x16 affine (runs once in XLA)
    w_eff = jnp.eye(IN_FEATURES, dtype=f32) + w1f.T @ w2f.T        # (16, 16)
    b_eff = b1f @ w2f.T + b2f                                      # (16,)

    # --- lane-pack: 8 rows of 16 features -> one 128-lane row
    m_pad = pl.cdiv(m, PACK) * PACK
    if m_pad != m:
        x2d = jnp.pad(x2d, ((0, m_pad - m), (0, 0)))
    r = m_pad // PACK                                              # packed rows
    x_pack = x2d.reshape(r, LANES)

    w_pack = jnp.kron(jnp.eye(PACK, dtype=f32), w_eff)             # (128, 128)
    b_pack = jnp.tile(b_eff, PACK).reshape(1, LANES)               # (1, 128)

    # --- row tiling: (tm, 128) tiles, pipelined & double-buffered by BlockSpec
    if r <= tile_rows:
        tm = r                      # single block == full array dims (always legal)
        r_pad = r
    else:
        tm = tile_rows
        r_pad = pl.cdiv(r, tm) * tm
        if r_pad != r:
            x_pack = jnp.pad(x_pack, ((0, r_pad - r), (0, 0)))
    grid = (r_pad // tm,)

    cost = pl.CostEstimate(
        flops=2 * r_pad * LANES * LANES,
        transcendentals=0,
        bytes_accessed=(2 * r_pad * LANES + LANES * LANES + LANES) * 4,
    )

    out_pack = pl.pallas_call(
        _fused_affine_kernel,
        out_shape=jax.ShapeDtypeStruct((r_pad, LANES), x.dtype),
        grid=grid,
        in_specs=[
            pl.BlockSpec((tm, LANES), lambda i: (i, 0)),     # x tiles over rows
            pl.BlockSpec((LANES, LANES), lambda i: (0, 0)),  # packed weight, resident
            pl.BlockSpec((1, LANES), lambda i: (0, 0)),      # packed bias, resident
        ],
        out_specs=pl.BlockSpec((tm, LANES), lambda i: (i, 0)),
        compiler_params=pltpu.CompilerParams(
            dimension_semantics=("parallel",),
        ),
        cost_estimate=cost,
    )(x_pack, w_pack, b_pack)

    # --- unpack, drop padding, flatten(start_dim=1)
    out2d = out_pack.reshape(r_pad * PACK, IN_FEATURES)[:m]
    flat = math.prod(orig_shape[1:])
    return out2d.reshape(batch, flat)


def _reference_forward(x, w1, b1, w2, b2):
    x1 = jnp.einsum("...i,oi->...o", x, w1) + b1
    x2 = jnp.einsum("...i,oi->...o", x1, w2) + b2
    x3 = x + x2
    return x3.reshape(x.shape[0], -1)


if __name__ == "__main__":
    key = jax.random.PRNGKey(0)
    k_x, k_w1, k_b1, k_w2, k_b2 = jax.random.split(key, 5)

    # Small input consistent with Linear(in_features=16): (batch=2, seq=4, 16)
    x = jax.random.normal(k_x, (2, 4, IN_FEATURES), dtype=jnp.float32)

    # Deterministic parameters (bias1=True, bias2=True), torch layout [out, in].
    w1 = jax.random.normal(k_w1, (HIDDEN, IN_FEATURES), dtype=jnp.float32) * 0.1
    b1 = jax.random.normal(k_b1, (HIDDEN,), dtype=jnp.float32) * 0.1
    w2 = jax.random.normal(k_w2, (IN_FEATURES, HIDDEN), dtype=jnp.float32) * 0.1
    b2 = jax.random.normal(k_b2, (IN_FEATURES,), dtype=jnp.float32) * 0.1

    out = simple_module2_forward(x, w1, b1, w2, b2)
    jax.block_until_ready(out)

    ref = _reference_forward(x, w1, b1, w2, b2)
    assert out.shape == (2, 4 * IN_FEATURES), out.shape
    assert jnp.allclose(out, ref, atol=1e-5, rtol=1e-5), "mismatch vs reference"

    print("KERNEL_OK")
</pallas_src>

<mosaic_0001>
module attributes {stable_mosaic.version = 11 : i64} {
  func.func @_fused_affine_kernel(%arg0: i32, %arg1: memref<1x128xf32, #tpu.memory_space<vmem>>, %arg2: memref<128x128xf32, #tpu.memory_space<vmem>>, %arg3: memref<1x128xf32, #tpu.memory_space<vmem>>, %arg4: memref<1x128xf32, #tpu.memory_space<vmem>>) attributes {dimension_semantics = [#tpu.dimension_semantics<parallel>], iteration_bounds = array<i64: 1>, scalar_prefetch = 0 : i64, scratch_operands = 0 : i64, tpu.core_type = #tpu.core_type<tc>, window_params = [{transform_indices = @transform_0, window_bounds = array<i64: 1, 128>}, {pipeline_mode = #tpu.pipeline_mode<synchronous>, transform_indices = @transform_1, window_bounds = array<i64: 128, 128>}, {pipeline_mode = #tpu.pipeline_mode<synchronous>, transform_indices = @transform_2, window_bounds = array<i64: 1, 128>}, {transform_indices = @transform_3, window_bounds = array<i64: 1, 128>}]} {
    %c0 = arith.constant 0 : index
    %c0_0 = arith.constant 0 : index
    %0 = vector.load %arg1[%c0, %c0_0] : memref<1x128xf32, #tpu.memory_space<vmem>>, vector<1x128xf32>
    %c0_1 = arith.constant 0 : index
    %c0_2 = arith.constant 0 : index
    %1 = vector.load %arg2[%c0_1, %c0_2] : memref<128x128xf32, #tpu.memory_space<vmem>>, vector<128x128xf32>
    %cst = arith.constant dense<0.000000e+00> : vector<1x128xf32>
    %2 = tpu.matmul %0, %1, %cst {dimension_numbers = #tpu.dot_dimension_numbers<[1], [0], [0], [1], [0, 0, 1, 1], [], []>} : vector<1x128xf32>, vector<128x128xf32>, vector<1x128xf32> -> vector<1x128xf32>
    %c0_3 = arith.constant 0 : index
    %c0_4 = arith.constant 0 : index
    %3 = vector.load %arg3[%c0_3, %c0_4] : memref<1x128xf32, #tpu.memory_space<vmem>>, vector<1x128xf32>
    %4 = arith.addf %2, %3 : vector<1x128xf32>
    %c0_5 = arith.constant 0 : index
    %c0_6 = arith.constant 0 : index
    %5 = vector.load %arg4[%c0_5, %c0_6] : memref<1x128xf32, #tpu.memory_space<vmem>>, vector<1x128xf32>
    tpu.vector_store %arg4[%c0_5, %c0_6], %4 {strides = array<i32>} : memref<1x128xf32, #tpu.memory_space<vmem>>, vector<1x128xf32>,
    return
  }
  func.func @transform_0(%arg0: i32) -> (i32, i32) {
    %c0_i32 = arith.constant 0 : i32
    %c0_i32_0 = arith.constant 0 : i32
    return %arg0, %c0_i32 : i32, i32
  }
  func.func @transform_1(%arg0: i32) -> (i32, i32) {
    %c0_i32 = arith.constant 0 : i32
    %c0_i32_0 = arith.constant 0 : i32
    %c0_i32_1 = arith.constant 0 : i32
    return %c0_i32, %c0_i32_0 : i32, i32
  }
  func.func @transform_2(%arg0: i32) -> (i32, i32) {
    %c0_i32 = arith.constant 0 : i32
    %c0_i32_0 = arith.constant 0 : i32
    %c0_i32_1 = arith.constant 0 : i32
    return %c0_i32, %c0_i32_0 : i32, i32
  }
  func.func @transform_3(%arg0: i32) -> (i32, i32) {
    %c0_i32 = arith.constant 0 : i32
    %c0_i32_0 = arith.constant 0 : i32
    return %arg0, %c0_i32 : i32, i32
  }
}

</mosaic_0001>

<bundles_post_ra>
// kernel: tpu_custom_call.1
= control target key start
LH: loop header
LB: loop body
LE: loop exit
PB: predicated region body
PF: predicated region fallthrough
CT: control target
= control target key end

     0   :  { %8 = vsyncpa [#allocation3], 0  ;;  %s376_s0 = inlined_call_operand.hbm [shape: f32[1,128], index: 0, kind: input, shape index: {}]   ;;  %s377_s1 = inlined_call_operand.hbm [shape: f32[128,128], index: 1, kind: input, shape index: {}]   ;;  %s378_s2 = inlined_call_operand.vmem [shape: f32[1,128], index: 2, kind: input, shape index: {}]   ;;  %s379_s3 = inlined_call_operand.hbm [shape: f32[1,128], index: 3, kind: output, shape index: {}]  }
   0x1   :  { %9 = vsyncpa [#allocation6], 0 }
   0x2   :  { %10 = vsyncpa [#allocation4], 0  ;;  %s302_s12 = smov [#allocation2]   ;;  %s303_s14 = smov [#allocation5]  }
   0x3   :  { %s17_s13 = sshll.u32 %s302_s12, 4  ;;  %s26_s15 = sshll.u32 %s303_s14, 4  ;;  %s18_s13 = int_to_ptr.vmem [resolvable:$true] %s17_s13  ;;  %s330_s15 = int_to_ptr.vmem [resolvable:$true] %s26_s15 }
   0x4   :  { %s230_s18 = scalar_lea.hbm %s376_s0, 16 }
   0x5   :  { %p231_p0 = scmp.ne.s32.totalorder %s376_s0, %s230_s18  ;;  %p234_p1 = scmp.lt.u32.totalorder %s230_s18, %s376_s0 }
   0x7   :  { %p236_p2 = pnand %p234_p1, %p231_p0 }
   0x9   :  { %239 = shalt.err (!%p236_p2)
}
   0xa   :  { %s240_s23 = scalar_lea.vmem %s18_s13, 16  ;;  %s244_s24 = scalar_lea.vmem %s18_s13, 32 }
   0xb   :  { %p241_p3 = scmp.ne.s32.totalorder %s18_s13, %s240_s23  ;;  %p245_p4 = scmp.lt.s32.totalorder %s18_s13, %s18_s13 }
   0xc   :  { %p246_p5 = scmp.lt.s32.totalorder %s244_s24, %s240_s23 }
   0xe   :  { %p247_p6 = por %p246_p5, %p245_p4 }
  0x10   :  { %p248_p7 = pnand %p247_p6, %p241_p3 }
  0x12   :  { %251 = shalt.err (!%p248_p7)
}
  0x13   :  { %20 = dma.hbm_to_vmem [thread:$0]  %s376_s0, 16, %s18_s13, [#allocation3]  }
  0x14   :  { %s252_s29 = scalar_lea.hbm %s377_s1, 2048 }
  0x15   :  { %p253_p8 = scmp.ne.s32.totalorder %s377_s1, %s252_s29  ;;  %p256_p9 = scmp.lt.u32.totalorder %s252_s29, %s377_s1 }
  0x17   :  { %p258_p10 = pnand %p256_p9, %p253_p8 }
  0x19   :  { %261 = shalt.err (!%p258_p10)
}
  0x1a   :  { %s262_s7 = scalar_lea.vmem %s330_s15, 2048  ;;  %p267_p12 = scmp.lt.s32.totalorder %s330_s15, %s330_s15 }
  0x1b   :  { %p263_p11 = scmp.ne.s32.totalorder %s330_s15, %s262_s7  ;;  %p268_p13 = scmp.lt.s32.totalorder %s262_s7, %s262_s7 }
  0x1d   :  { %p269_p0 = por %p268_p13, %p267_p12 }
  0x1f   :  { %p270_p1 = pnand %p269_p0, %p263_p11 }
  0x21   :  { %273 = shalt.err (!%p270_p1)
}
  0x22   :  { %s304_s0 = smov 128   ;;  %s305_s8 = smov 8  }
  0x23   :  { %32 = dma.hbm_to_vmem [thread:$0]  %s377_s1, 2048, %s330_s15, [#allocation6], %s304_s0, %s304_s0, %s305_s8  }
  0x24   :  { %296 = dma.done.wait [#allocation3], 16  }
  0x25   :  { %297 = vsyncadd [#allocation3], 4294967280 }
  0x26   :  { %298 = dma.done.wait [#allocation6], 2048  }
  0x27   :  { %299 = vsyncadd [#allocation6], 4294965248  ;;  %v306_v0 = vmov 0.0|0.0   ;;  %vm307_vm0 = vmmov 0   ;;  %v308_v1 = vmov 0.0   ;;  %v42_v2 = vld [vmem:[#allocation5] sm:$0xff] }
  0x28   :  { %198 = vmatprep.subr.bf16.mxu0 %v306_v0  ;;  %195 = vmatprep.mubr.msk.f32.mxu0 %vm307_vm0, %v308_v1  ;;  %v43_v3 = vld [vmem:[#allocation5 + $0x8] sm:$0xff]  ;;  %v44_v4 = vld [vmem:[#allocation5 + $0x10] sm:$0xff]  ;;  %v45_v6 = vld [vmem:[#allocation5 + $0x18] sm:$0xff]  ;;  %s309_s12 = smov [#allocation7]  }
  0x29   :  { %v199_v5 = vpack.c.bf16 %v43_v3, %v42_v2  ;;  %v202_v7 = vpack.c.bf16 %v45_v6, %v44_v4  ;;  %v46_v8 = vld [vmem:[#allocation5 + $0x20] sm:$0xff]  ;;  %v47_v9 = vld [vmem:[#allocation5 + $0x28] sm:$0xff]  ;;  %v48_v11 = vld [vmem:[#allocation5 + $0x30] sm:$0xff]  ;;  %s136_s13 = sshll.u32 %s309_s12, 4  ;;  %s137_s13 = int_to_ptr.vmem [resolvable:$true] %s136_s13 }
  0x2a   :  { %v205_v10 = vpack.c.bf16 %v47_v9, %v46_v8  ;;  %v49_v12 = vld [vmem:[#allocation5 + $0x38] sm:$0xff]  ;;  %v50_v14 = vld [vmem:[#allocation5 + $0x40] sm:$0xff]  ;;  %v51_v15 = vld [vmem:[#allocation5 + $0x48] sm:$0xff]  ;;  %s274_s14 = scalar_lea.vmem %s137_s13, 16  ;;  %s278_s15 = scalar_lea.vmem %s137_s13, 32 }
  0x2b   :  { %200 = vmatpush3.bf16.msra.mxu0 %v199_v5  ;;  %v208_v13 = vpack.c.bf16 %v49_v12, %v48_v11  ;;  %v211_v16 = vpack.c.bf16 %v51_v15, %v50_v14  ;;  %v52_v17 = vld [vmem:[#allocation5 + $0x50] sm:$0xff]  ;;  %v53_v18 = vld [vmem:[#allocation5 + $0x58] sm:$0xff]  ;;  %v54_v20 = vld [vmem:[#allocation5 + $0x60] sm:$0xff]  ;;  %p275_p2 = scmp.ne.s32.totalorder %s137_s13, %s274_s14  ;;  %p279_p3 = scmp.lt.s32.totalorder %s137_s13, %s137_s13 }
  0x2c   :  { %201 = vmatprep.subr.bf16.mxu0 %v306_v0  ;;  %v214_v19 = vpack.c.bf16 %v53_v18, %v52_v17  ;;  %v55_v21 = vld [vmem:[#allocation5 + $0x68] sm:$0xff]  ;;  %v56_v23 = vld [vmem:[#allocation5 + $0x70] sm:$0xff]  ;;  %v57_v24 = vld [vmem:[#allocation5 + $0x78] sm:$0xff]  ;;  %p280_p4 = scmp.lt.s32.totalorder %s278_s15, %s274_s14 }
  0x2d   :  { %v217_v22 = vpack.c.bf16 %v55_v21, %v54_v20  ;;  %v220_v25 = vpack.c.bf16 %v57_v24, %v56_v23  ;;  %v41_v26 = vld [vmem:[#allocation2] sm:$0x1] }
  0x2e   :  { %v58_v27 = vld [vmem:[%s378_s2] sm:$0x1]  ;;  %p281_p5 = por %p280_p4, %p279_p3 }
  0x2f   :  { %203 = vmatpush3.bf16.msra.mxu0 %v202_v7 }
  0x30   :  { %204 = vmatprep.subr.bf16.mxu0 %v306_v0  ;;  %p282_p6 = pnand %p281_p5, %p275_p2 }
  0x33   :  { %206 = vmatpush3.bf16.msra.mxu0 %v205_v10 }
  0x34   :  { %207 = vmatprep.subr.bf16.mxu0 %v306_v0 }
  0x37   :  { %209 = vmatpush3.bf16.msra.mxu0 %v208_v13 }
  0x38   :  { %210 = vmatprep.subr.bf16.mxu0 %v306_v0 }
  0x3b   :  { %212 = vmatpush3.bf16.msra.mxu0 %v211_v16 }
  0x3c   :  { %213 = vmatprep.subr.bf16.mxu0 %v306_v0 }
  0x3f   :  { %215 = vmatpush3.bf16.msra.mxu0 %v214_v19 }
  0x40   :  { %216 = vmatprep.subr.bf16.mxu0 %v306_v0 }
  0x43   :  { %218 = vmatpush3.bf16.msra.mxu0 %v217_v22 }
  0x44   :  { %219 = vmatprep.subr.bf16.mxu0 %v306_v0 }
  0x47   :  { %221 = vmatpush3.bf16.msra.mxu0 %v220_v25 }
  0x4a   :  { %196 = vmatmul.mubr.f32.vlgmr.msra.gmra.mrb[0].mxu0 %v41_v26 }
 0x11d   :  { %v125_v28 = vpop.f32.mrb[0].mxu0 }
 0x11e   :  { %v126_v29 = vadd.f32 %v125_v28, %v58_v27  ;;  %v197_v30 = vpop.f32.mrb[1].mxu0 }
 0x120   :  { %129 = vst [vmem:[#allocation7] sm:$0x1] %v126_v29 }
 0x121   :  { %285 = shalt.err (!%p282_p6)
}
 0x122   :  { %s286_s18 = scalar_lea.hbm %s379_s3, 16 }
 0x123   :  { %p287_p7 = scmp.ne.s32.totalorder %s379_s3, %s286_s18  ;;  %p290_p8 = scmp.lt.u32.totalorder %s286_s18, %s379_s3 }
 0x125   :  { %p292_p9 = pnand %p290_p8, %p287_p7 }
 0x127   :  { %295 = shalt.err (!%p292_p9)
}
 0x128   :  { %139 = dma.vmem_to_hbm [thread:$0]  %s137_s13, 16, %s379_s3, [#allocation4]  }
 0x129   :  { %300 = dma.done.wait [#allocation4], 16  }
 0x12a   :  { %301 = vsyncadd [#allocation4], 4294967280 }
 0x12b   :  { %143 = vsyncpa [#allocation3], 1 }
 0x12c   :  { %144 = vsyncpa [#allocation6], 1 }
 0x12d   :  { %145 = vsyncpa [#allocation4], 1 }

</bundles_post_ra>
